<compile_context>
chip_gen: v7x
topology: tpu7x:2x2x1
jax: 0.10.0
libtpu: 0.0.40
codegen_flags: <defaults>
</compile_context>

<pallas_src>
import jax
import jax.numpy as jnp
from jax.experimental import pallas as pl
from jax.experimental.pallas import tpu as pltpu


def _round_up(x, m):
    return ((x + m - 1) // m) * m


def _encoder_kernel(frames_ref, w_ref, b_ref, out_ref):
    # frames: [TM, hop] f32 (cast to bf16 here for MXU rate)
    # w:      [hop, Dp] bf16 (VMEM-resident, single-buffered)
    # b:      [1,  Dp] f32  (VMEM-resident, single-buffered)
    # out:    [TM, Dp] out_dtype
    a = frames_ref[...].astype(jnp.bfloat16)
    acc = jnp.dot(a, w_ref[...], preferred_element_type=jnp.float32)
    out_ref[...] = (acc + b_ref[...]).astype(out_ref.dtype)


def wav_encoder_forward(x, params, *, hop_length, out_dtype=jnp.bfloat16,
                        vmem_budget_bytes=24 * 1024 * 1024):
    """Mirrors WavEncoder.forward (pre_net=None, post_net=None)."""
    wav = x['wav']                     # [B, 1, T]  (PyTorch NCW)
    wav_lens = x['wav_lens']           # [B] int
    B, C, T = wav.shape
    assert C == 1, "synthetic encoder expects mono wav [B, 1, T]"

    w = params['w']                    # [hop, D]
    b = params['b']                    # [1, D]
    hop, D = w.shape
    assert hop == hop_length

    Tf = T // hop_length
    M = B * Tf

    # Only pad D (weight columns) to a lane-dense multiple of 128; K (=hop)
    # and M are NOT padded -> no extra HBM passes over the input.
    Dp = _round_up(D, 128)

    # Glue: non-overlapping framing == stride==kernel conv im2col.
    # Slice first so T % hop_length != 0 is handled (conv drops the tail).
    frames = wav[:, 0, :Tf * hop_length].reshape(M, hop_length)
    frames = frames.astype(jnp.float32)          # no-op for f32 wav

    # Weight in bf16 (MXU operands), zero-padded columns -> numerics unchanged.
    w_p = jnp.pad(w.astype(jnp.bfloat16), ((0, 0), (0, Dp - D)))
    b_p = jnp.pad(b.astype(jnp.float32).reshape(1, D), ((0, 0), (0, Dp - D)))

    # Tile size over M from an explicit VMEM budget:
    #   2 double-buffered frames tiles + 2 double-buffered output tiles
    #   + resident (single-buffered) bf16 weight / f32 bias.
    out_itemsize = jnp.dtype(out_dtype).itemsize
    bytes_per_row = 2 * hop * 4 + 2 * Dp * out_itemsize
    resident_bytes = hop * Dp * 2 + Dp * 4
    tm_budget = max(16, (vmem_budget_bytes - resident_bytes) // bytes_per_row)
    # Guarantee >= 2 grid steps for large M so both v7x TensorCores get work.
    tm_split = _round_up(pl.cdiv(M, 2), 256)
    TM = min(int(tm_budget), 4096, int(tm_split))
    TM = max(16, (TM // 16) * 16)      # bf16 sublane tile -> unmasked stores
    if TM >= M:
        TM = M                         # single full block (full-dim is legal)
    grid_m = pl.cdiv(M, TM)

    # VMEM limit derived from actual consumption + headroom (safe on v7x's
    # 64 MiB per-core VMEM; also overrides v5e's small 16 MiB scoped default).
    vmem_limit = int(min(resident_bytes + TM * bytes_per_row + (6 << 20),
                         56 << 20))
    vmem_limit = max(vmem_limit, 16 << 20)

    feats_p = pl.pallas_call(
        _encoder_kernel,
        out_shape=jax.ShapeDtypeStruct((M, Dp), out_dtype),
        grid=(grid_m,),
        in_specs=[
            # frames: tiled over M, K kept as the full (unpadded) hop dim.
            pl.BlockSpec((TM, hop), lambda i: (i, 0)),
            # weight / bias: VMEM-resident, single-buffered (invariant operand).
            pl.BlockSpec((hop, Dp), lambda i: (0, 0),
                         pipeline_mode=pl.Buffered(1)),
            pl.BlockSpec((1, Dp), lambda i: (0, 0),
                         pipeline_mode=pl.Buffered(1)),
        ],
        out_specs=pl.BlockSpec((TM, Dp), lambda i: (i, 0)),
        compiler_params=pltpu.CompilerParams(
            dimension_semantics=("parallel",),          # megacore on v7x
            vmem_limit_bytes=vmem_limit,
        ),
    )(frames, w_p, b_p)

    # Slice padded feature columns back (identity when D % 128 == 0);
    # y = self.encoder(y) -> [B, Tf, D].
    feats = feats_p if Dp == D else feats_p[:, :D]
    feats = feats.reshape(B, Tf, D)

    out = dict(x)
    out['wav_features'] = feats
    # make_padding_mask: trivial integer glue, computed in plain JAX.
    # Polarity matches the PyTorch reference: True for padded (invalid) frames.
    flen = (wav_lens.astype(jnp.int32) // hop_length).astype(jnp.int32)
    out['features_len'] = flen
    out['feature_padding_mask'] = (
        flen[:, None] <= jnp.arange(Tf, dtype=jnp.int32)[None, :])
    # TODO(synk): pre_net / post_net are optional submodules (None here); if
    # configured they would wrap the encoder kernel with extra pallas_calls.
    return out


if __name__ == "__main__":
    # Small deterministic config.
    B, T, HOP, D = 2, 64, 4, 32
    Tf = T // HOP

    key = jax.random.PRNGKey(0)
    k_wav, k_w, k_b = jax.random.split(key, 3)

    wav = jax.random.normal(k_wav, (B, 1, T), dtype=jnp.float32)
    wav_lens = jnp.array([64, 40], dtype=jnp.int32)

    params = {
        'w': 0.1 * jax.random.normal(k_w, (HOP, D), dtype=jnp.float32),
        'b': 0.1 * jax.random.normal(k_b, (1, D), dtype=jnp.float32),
    }

    x = {'wav': wav, 'wav_lens': wav_lens}
    out = wav_encoder_forward(x, params, hop_length=HOP)
    jax.block_until_ready(out['wav_features'])
    jax.block_until_ready(out['feature_padding_mask'])

    # Reference check (plain JAX) for the forward semantics.
    ref_feats = wav.reshape(B, Tf, HOP) @ params['w'] + params['b'][0]
    ref_flen = wav_lens // HOP
    ref_mask = ref_flen[:, None] <= jnp.arange(Tf)[None, :]

    assert out['wav_features'].shape == (B, Tf, D)
    assert out['wav_features'].dtype == jnp.bfloat16
    # bf16 operands + bf16 output: compare with bf16-appropriate tolerance.
    assert jnp.allclose(out['wav_features'].astype(jnp.float32), ref_feats,
                        atol=2e-2, rtol=2e-2)
    assert jnp.array_equal(out['features_len'], ref_flen)
    assert jnp.array_equal(out['feature_padding_mask'], ref_mask)

    print("KERNEL_OK")
</pallas_src>

<mosaic_0001>
module attributes {stable_mosaic.version = 11 : i64} {
  func.func @_encoder_kernel(%arg0: i32, %arg1: memref<32x4xf32, #tpu.memory_space<vmem>>, %arg2: memref<4x128xbf16, #tpu.memory_space<vmem>>, %arg3: memref<1x128xf32, #tpu.memory_space<vmem>>, %arg4: memref<32x128xbf16, #tpu.memory_space<vmem>>) attributes {dimension_semantics = [#tpu.dimension_semantics<parallel>], iteration_bounds = array<i64: 1>, scalar_prefetch = 0 : i64, scratch_operands = 0 : i64, tpu.core_type = #tpu.core_type<tc>, window_params = [{transform_indices = @transform_0, window_bounds = array<i64: 32, 4>}, {pipeline_mode = #tpu.pipeline_mode<synchronous>, transform_indices = @transform_1, window_bounds = array<i64: 4, 128>}, {pipeline_mode = #tpu.pipeline_mode<synchronous>, transform_indices = @transform_2, window_bounds = array<i64: 1, 128>}, {transform_indices = @transform_3, window_bounds = array<i64: 32, 128>}]} {
    %c0 = arith.constant 0 : index
    %c0_0 = arith.constant 0 : index
    %0 = vector.load %arg1[%c0, %c0_0] : memref<32x4xf32, #tpu.memory_space<vmem>>, vector<32x4xf32>
    %1 = arith.truncf %0 : vector<32x4xf32> to vector<32x4xbf16>
    %c0_1 = arith.constant 0 : index
    %c0_2 = arith.constant 0 : index
    %2 = vector.load %arg2[%c0_1, %c0_2] : memref<4x128xbf16, #tpu.memory_space<vmem>>, vector<4x128xbf16>
    %cst = arith.constant dense<0.000000e+00> : vector<32x128xf32>
    %3 = tpu.matmul %1, %2, %cst {dimension_numbers = #tpu.dot_dimension_numbers<[1], [0], [0], [1], [0, 0, 1, 1], [], []>} : vector<32x4xbf16>, vector<4x128xbf16>, vector<32x128xf32> -> vector<32x128xf32>
    %c0_3 = arith.constant 0 : index
    %c0_4 = arith.constant 0 : index
    %4 = vector.load %arg3[%c0_3, %c0_4] : memref<1x128xf32, #tpu.memory_space<vmem>>, vector<1x128xf32>
    %5 = vector.broadcast %4 : vector<1x128xf32> to vector<32x128xf32>
    %6 = arith.addf %3, %5 : vector<32x128xf32>
    %7 = arith.truncf %6 : vector<32x128xf32> to vector<32x128xbf16>
    %c0_5 = arith.constant 0 : index
    %c0_6 = arith.constant 0 : index
    %8 = vector.load %arg4[%c0_5, %c0_6] : memref<32x128xbf16, #tpu.memory_space<vmem>>, vector<32x128xbf16>
    tpu.vector_store %arg4[%c0_5, %c0_6], %7 {strides = array<i32>} : memref<32x128xbf16, #tpu.memory_space<vmem>>, vector<32x128xbf16>,
    return
  }
  func.func @transform_0(%arg0: i32) -> (i32, i32) {
    %c0_i32 = arith.constant 0 : i32
    %c0_i32_0 = arith.constant 0 : i32
    return %arg0, %c0_i32 : i32, i32
  }
  func.func @transform_1(%arg0: i32) -> (i32, i32) {
    %c0_i32 = arith.constant 0 : i32
    %c0_i32_0 = arith.constant 0 : i32
    %c0_i32_1 = arith.constant 0 : i32
    return %c0_i32, %c0_i32_0 : i32, i32
  }
  func.func @transform_2(%arg0: i32) -> (i32, i32) {
    %c0_i32 = arith.constant 0 : i32
    %c0_i32_0 = arith.constant 0 : i32
    %c0_i32_1 = arith.constant 0 : i32
    return %c0_i32, %c0_i32_0 : i32, i32
  }
  func.func @transform_3(%arg0: i32) -> (i32, i32) {
    %c0_i32 = arith.constant 0 : i32
    %c0_i32_0 = arith.constant 0 : i32
    return %arg0, %c0_i32 : i32, i32
  }
}

</mosaic_0001>

<bundles_post_ra>
// kernel: tpu_custom_call.1
= control target key start
LH: loop header
LB: loop body
LE: loop exit
PB: predicated region body
PF: predicated region fallthrough
CT: control target
= control target key end

     0   :  { %vm37_vm0 = vcmask 1041408   ;;  %vm30_vm1 = vcmask 31744   ;;  %s238_s0 = inlined_call_operand.vmem [shape: f32[32,4], index: 0, kind: input, shape index: {}]   ;;  %s239_s1 = inlined_call_operand.vmem [shape: bf16[4,128], index: 1, kind: input, shape index: {}]   ;;  %s240_s2 = inlined_call_operand.vmem [shape: f32[1,128], index: 2, kind: input, shape index: {}]   ;;  %s241_s3 = inlined_call_operand.hbm [shape: bf16[32,128], index: 3, kind: output, shape index: {}]  }
   0x1   :  { %v22_v0 = vld [vmem:[%s239_s1] sm:$0x3]  ;;  %v17_v2 = vld [vmem:[%s238_s0 + $0x8] sm:$0xff]  ;;  %v18_v5 = vld [vmem:[%s238_s0 + $0x10] sm:$0xff] }
   0x2   :  { %v16_v1 = vld [vmem:[%s238_s0] sm:$0xff]  ;;  %157 = vmatprep.subr.msk.bf16.mxu0 %vm37_vm0, %v22_v0  ;;  %v39_v3 = vsel %vm37_vm0, %v22_v0, 0  ;;  %v19_v6 = vld [vmem:[%s238_s0 + $0x18] sm:$0xff] }
   0x3   :  { %v20_v4 = vpack.c.bf16 %v17_v2, %v16_v1 }
   0x4   :  { %8 = vsyncpa [#allocation3], 0  ;;  %152 = vmatpush3.bf16.msra.mxu0 %v39_v3  ;;  %v21_v7 = vpack.c.bf16 %v19_v6, %v18_v5  ;;  %v126_v9 = vld [vmem:[%s240_s2] ss:$0 sm:$0xff]  ;;  %s185_s23 = smov [#allocation2]  }
   0x5   :  { %153 = vmatprep.mubr.msk.bf16.mxu0 %vm30_vm1, %v20_v4  ;;  %s115_s24 = sshll.u32 %s185_s23, 4  ;;  %s116_s24 = int_to_ptr.vmem [resolvable:$true] %s115_s24 }
   0x6   :  { %s161_s0 = scalar_lea.vmem %s116_s24, 256  ;;  %p166_p1 = scmp.lt.s32.totalorder %s116_s24, %s116_s24 }
   0x7   :  { %154 = vmatmul.mubr.msk.bf16.vlgmr.msra.gmra.mrb[0].mxu0 %vm30_vm1, %v21_v7  ;;  %p162_p0 = scmp.ne.s32.totalorder %s116_s24, %s161_s0  ;;  %p167_p2 = scmp.lt.s32.totalorder %s161_s0, %s161_s0 }
   0x9   :  { %p168_p3 = por %p167_p2, %p166_p1 }
   0xb   :  { %p169_p4 = pnand %p168_p3, %p162_p0 }
  0xda   :  { %v155_v8 = vpop.f32.mrb[0].mxu0 }
  0xdb   :  { %v75_v10 = vpop.f32.mrb[1].mxu0  ;;  %v84_v12 = vadd.f32 %v155_v8, %v126_v9 }
  0xdc   :  { %v156_v11 = vpop.f32.mrb[2].mxu0  ;;  %v76_v15 = vadd.f32 %v126_v9, %v75_v10 }
  0xdd   :  { %v87_v13 = vadd.f32 %v156_v11, %v126_v9  ;;  %v78_v14 = vpop.f32.mrb[3].mxu0 }
  0xde   :  { %v79_v16 = vadd.f32 %v126_v9, %v78_v14 }
  0xdf   :  { %v145_v17 = vpack.c.bf16 %v87_v13, %v84_v12 }
  0xe0   :  { %v140_v18 = vpack.c.bf16 %v79_v16, %v76_v15 }
  0xe1   :  { %147 = vst [vmem:[#allocation2 + $0x8] sm:$0xff] %v145_v17  }
  0xe2   :  { %141 = vst [vmem:[#allocation2] sm:$0xff] %v140_v18  }
  0xe3   :  { %172 = shalt.err (!%p169_p4)
}
  0xe4   :  { %s173_s26 = scalar_lea.hbm %s241_s3, 256 }
  0xe5   :  { %p174_p5 = scmp.ne.s32.totalorder %s241_s3, %s173_s26  ;;  %p177_p6 = scmp.lt.u32.totalorder %s173_s26, %s241_s3 }
  0xe7   :  { %p179_p7 = pnand %p177_p6, %p174_p5 }
  0xe9   :  { %182 = shalt.err (!%p179_p7)
}
  0xea   :  { %s186_s4 = smov 64   ;;  %s187_s5 = smov 4  }
  0xeb   :  { %121 = dma.vmem_to_hbm [thread:$0]  %s116_s24, 256, %s241_s3, [#allocation3], %s186_s4, %s186_s4, %s187_s5  }
  0xec   :  { %183 = dma.done.wait [#allocation3], 256  }
  0xed   :  { %184 = vsyncadd [#allocation3], 4294967040 }
  0xee   :  { %125 = vsyncpa [#allocation3], 1 }

</bundles_post_ra>
